<compile_context>
chip_gen: v6e
topology: v6e:2x2x1
jax: 0.10.0
libtpu: 0.0.40
codegen_flags: <defaults>
</compile_context>

<pallas_src>
import jax
import jax.numpy as jnp
from jax.experimental import pallas as pl
from jax.experimental.pallas import tpu as pltpu


def _round_up(x, m):
    return (x + m - 1) // m * m


def fc_block_kernel(x_ref, w_ref, b_ref, o_ref):
    # Linear (BN already folded into W/b) on the MXU, f32 accumulation.
    acc = jnp.dot(x_ref[...], w_ref[...], preferred_element_type=jnp.float32)
    acc = acc + b_ref[...]
    # ReLU epilogue (VPU); dropout is identity in eval mode.
    o_ref[...] = jnp.maximum(acc, 0.0).astype(o_ref.dtype)


def full_connected_block_v0(x, w, b, bn_gamma, bn_beta, bn_mean, bn_var,
                            eps=1e-5, *, compute_dtype=jnp.float32):
    """Inference forward of FullConnectedBlock_v0.

    x: [B, in_channels] float32
    w: [in_channels, out_channels]   (transpose of PyTorch's [out, in])
    b: [out_channels]
    bn_*: BatchNorm1d(out_channels) parameters / running stats (eval mode).
    Returns [B, out_channels] float32.
    """
    B, E = x.shape
    N = w.shape[1]

    # ---- Fold BatchNorm (eval mode) into the linear: one-time parameter prep.
    scale = (bn_gamma / jnp.sqrt(bn_var + eps)).astype(jnp.float32)   # [N]
    shift = (bn_beta - bn_mean * scale).astype(jnp.float32)           # [N]
    w_f = (w.astype(jnp.float32) * scale[None, :])                    # [E, N]
    b_f = (b.astype(jnp.float32) * scale + shift)                     # [N]

    # ---- Pad to TPU-friendly shapes (lane-dense output, aligned MXU tiles).
    Ep = _round_up(E, 128)            # K padded to 128 (MXU depth alignment)
    Np = _round_up(N, 128)            # N padded to 128 (unmasked full-width vst)
    Bp = _round_up(B, 8)              # sublane alignment for the batch tile

    # Batch tile: big enough for HBM-roofline efficiency, capped so the
    # double-buffered resident set stays well inside v7x's smaller VMEM.
    if Bp <= 512:
        tm = Bp
    else:
        tm = 512
        Bp = _round_up(Bp, tm)
    # Output-column tile: single block for modest N, 512-wide otherwise.
    if Np <= 512:
        tn = Np
    else:
        tn = 512
        Np = _round_up(Np, tn)

    x_p = jnp.zeros((Bp, Ep), compute_dtype).at[:B, :E].set(x.astype(compute_dtype))
    w_p = jnp.zeros((Ep, Np), compute_dtype).at[:E, :N].set(w_f.astype(compute_dtype))
    b_p = jnp.zeros((1, Np), jnp.float32).at[0, :N].set(b_f)

    grid = (Bp // tm, Np // tn)

    out_padded = pl.pallas_call(
        fc_block_kernel,
        out_shape=jax.ShapeDtypeStruct((Bp, Np), jnp.float32),
        grid_spec=pltpu.PrefetchScalarGridSpec(
            num_scalar_prefetch=0,
            grid=grid,
            in_specs=[
                pl.BlockSpec((tm, Ep), lambda i, j: (i, 0)),   # x tile (streams over batch)
                pl.BlockSpec((Ep, tn), lambda i, j: (0, j)),   # W tile (resident per N-tile)
                pl.BlockSpec((1, tn), lambda i, j: (0, j)),    # fused bias (resident)
            ],
            out_specs=pl.BlockSpec((tm, tn), lambda i, j: (i, j)),
        ),
        compiler_params=pltpu.CompilerParams(
            dimension_semantics=("parallel", "parallel")),
    )(x_p, w_p, b_p)

    return out_padded[:B, :N]


if __name__ == "__main__":
    key = jax.random.PRNGKey(0)

    # Small shapes consistent with the module: batch=2, hidden 32 -> 16.
    B = 2
    in_channels = 32
    out_channels = 16
    dropout_rate = 0.5   # no effect in eval mode

    k1, k2, k3 = jax.random.split(key, 3)
    x = jax.random.normal(k1, (B, in_channels), dtype=jnp.float32)
    w = jax.random.normal(k2, (in_channels, out_channels), dtype=jnp.float32) * 0.1
    b = jax.random.normal(k3, (out_channels,), dtype=jnp.float32) * 0.1

    # Deterministic BatchNorm1d(out_channels) parameters / running stats.
    cols = jnp.arange(out_channels, dtype=jnp.float32)
    bn_gamma = 1.0 + 0.05 * cols
    bn_beta = 0.1 - 0.02 * cols
    bn_mean = 0.05 * cols
    bn_var = 0.8 + 0.01 * cols

    out = full_connected_block_v0(x, w, b, bn_gamma, bn_beta, bn_mean, bn_var)
    jax.block_until_ready(out)

    # Pure-JAX reference: relu(bn(linear(x))) in eval mode.
    z = x @ w + b
    y = (z - bn_mean) / jnp.sqrt(bn_var + 1e-5) * bn_gamma + bn_beta
    ref = jnp.maximum(y, 0.0)

    assert out.shape == (B, out_channels)
    assert jnp.allclose(out, ref, atol=1e-4, rtol=1e-4), (
        f"max abs err {jnp.max(jnp.abs(out - ref))}")
    print("KERNEL_OK")
</pallas_src>

<mosaic_0001>
module attributes {stable_mosaic.version = 11 : i64} {
  func.func @fc_block_kernel(%arg0: i32, %arg1: i32, %arg2: memref<8x128xf32, #tpu.memory_space<vmem>>, %arg3: memref<128x128xf32, #tpu.memory_space<vmem>>, %arg4: memref<1x128xf32, #tpu.memory_space<vmem>>, %arg5: memref<8x128xf32, #tpu.memory_space<vmem>>) attributes {dimension_semantics = [#tpu.dimension_semantics<parallel>, #tpu.dimension_semantics<parallel>], iteration_bounds = array<i64: 1, 1>, scalar_prefetch = 0 : i64, scratch_operands = 0 : i64, tpu.core_type = #tpu.core_type<tc>, window_params = [{transform_indices = @transform_0, window_bounds = array<i64: 8, 128>}, {transform_indices = @transform_1, window_bounds = array<i64: 128, 128>}, {transform_indices = @transform_2, window_bounds = array<i64: 1, 128>}, {transform_indices = @transform_3, window_bounds = array<i64: 8, 128>}]} {
    %c0 = arith.constant 0 : index
    %c0_0 = arith.constant 0 : index
    %0 = vector.load %arg2[%c0, %c0_0] : memref<8x128xf32, #tpu.memory_space<vmem>>, vector<8x128xf32>
    %c0_1 = arith.constant 0 : index
    %c0_2 = arith.constant 0 : index
    %1 = vector.load %arg3[%c0_1, %c0_2] : memref<128x128xf32, #tpu.memory_space<vmem>>, vector<128x128xf32>
    %cst = arith.constant dense<0.000000e+00> : vector<8x128xf32>
    %2 = tpu.matmul %0, %1, %cst {dimension_numbers = #tpu.dot_dimension_numbers<[1], [0], [0], [1], [0, 0, 1, 1], [], []>} : vector<8x128xf32>, vector<128x128xf32>, vector<8x128xf32> -> vector<8x128xf32>
    %c0_3 = arith.constant 0 : index
    %c0_4 = arith.constant 0 : index
    %3 = vector.load %arg4[%c0_3, %c0_4] : memref<1x128xf32, #tpu.memory_space<vmem>>, vector<1x128xf32>
    %4 = vector.broadcast %3 : vector<1x128xf32> to vector<8x128xf32>
    %5 = arith.addf %2, %4 : vector<8x128xf32>
    %cst_5 = arith.constant 0.000000e+00 : f32
    %6 = vector.broadcast %cst_5 : f32 to vector<8x128xf32>
    %7 = arith.maximumf %5, %6 : vector<8x128xf32>
    %c0_6 = arith.constant 0 : index
    %c0_7 = arith.constant 0 : index
    %8 = vector.load %arg5[%c0_6, %c0_7] : memref<8x128xf32, #tpu.memory_space<vmem>>, vector<8x128xf32>
    tpu.vector_store %arg5[%c0_6, %c0_7], %7 {strides = array<i32>} : memref<8x128xf32, #tpu.memory_space<vmem>>, vector<8x128xf32>,
    return
  }
  func.func @transform_0(%arg0: i32, %arg1: i32) -> (i32, i32) {
    %c0_i32 = arith.constant 0 : i32
    %c0_i32_0 = arith.constant 0 : i32
    return %arg0, %c0_i32 : i32, i32
  }
  func.func @transform_1(%arg0: i32, %arg1: i32) -> (i32, i32) {
    %c0_i32 = arith.constant 0 : i32
    %c0_i32_0 = arith.constant 0 : i32
    return %c0_i32, %arg1 : i32, i32
  }
  func.func @transform_2(%arg0: i32, %arg1: i32) -> (i32, i32) {
    %c0_i32 = arith.constant 0 : i32
    %c0_i32_0 = arith.constant 0 : i32
    return %c0_i32, %arg1 : i32, i32
  }
  func.func @transform_3(%arg0: i32, %arg1: i32) -> (i32, i32) {
    %c0_i32 = arith.constant 0 : i32
    return %arg0, %arg1 : i32, i32
  }
}

</mosaic_0001>

<bundles_post_ra>
// kernel: tpu_custom_call.1
= control target key start
LH: loop header
LB: loop body
LE: loop exit
PB: predicated region body
PF: predicated region fallthrough
CT: control target
= control target key end

     0   :  { %8 = vsyncpa [#allocation3], 0  ;;  %s318_s0 = inlined_call_operand.hbm [shape: f32[8,128], index: 0, kind: input, shape index: {}]   ;;  %s319_s1 = inlined_call_operand.hbm [shape: f32[128,128], index: 1, kind: input, shape index: {}]   ;;  %s320_s2 = inlined_call_operand.vmem [shape: f32[1,128], index: 2, kind: input, shape index: {}]   ;;  %s321_s3 = inlined_call_operand.hbm [shape: f32[8,128], index: 3, kind: output, shape index: {}]  }
   0x1   :  { %9 = vsyncpa [#allocation6], 0 }
   0x2   :  { %10 = vsyncpa [#allocation4], 0  ;;  %s279_s12 = smov [#allocation2]   ;;  %s280_s14 = smov [#allocation5]  }
   0x3   :  { %s17_s13 = sshll.u32 %s279_s12, 4  ;;  %s26_s15 = sshll.u32 %s280_s14, 4  ;;  %s18_s13 = int_to_ptr.vmem [resolvable:$true] %s17_s13  ;;  %s27_s15 = int_to_ptr.vmem [resolvable:$true] %s26_s15 }
   0x4   :  { %s221_s16 = scalar_lea.vmem %s18_s13, 128  ;;  %p226_p1 = scmp.lt.s32.totalorder %s18_s13, %s18_s13 }
   0x5   :  { %p222_p0 = scmp.ne.s32.totalorder %s18_s13, %s221_s16  ;;  %p227_p2 = scmp.lt.s32.totalorder %s221_s16, %s221_s16 }
   0x7   :  { %p228_p3 = por %p227_p2, %p226_p1 }
   0x9   :  { %p229_p4 = pnand %p228_p3, %p222_p0 }
   0xb   :  { %232 = shalt.err (!%p229_p4)
}
   0xc   :  { %20 = dma.hbm_to_vmem [thread:$0]  %s318_s0, 128, %s18_s13, [#allocation3]  }
   0xd   :  { %s241_s19 = scalar_lea.vmem %s27_s15, 2048  ;;  %p246_p6 = scmp.lt.s32.totalorder %s27_s15, %s27_s15 }
   0xe   :  { %p242_p5 = scmp.ne.s32.totalorder %s27_s15, %s241_s19  ;;  %p247_p7 = scmp.lt.s32.totalorder %s241_s19, %s241_s19 }
  0x10   :  { %p248_p8 = por %p247_p7, %p246_p6 }
  0x12   :  { %p249_p9 = pnand %p248_p8, %p242_p5 }
  0x14   :  { %252 = shalt.err (!%p249_p9)
}
  0x15   :  { %s281_s20 = smov 128   ;;  %s282_s21 = smov 8  }
  0x16   :  { %32 = dma.hbm_to_vmem [thread:$0]  %s319_s1, 2048, %s27_s15, [#allocation6], %s281_s20, %s281_s20, %s282_s21  }
  0x17   :  { %273 = dma.done.wait [#allocation3], 128  }
  0x18   :  { %274 = vsyncadd [#allocation3], 4294967168 }
  0x19   :  { %275 = dma.done.wait [#allocation6], 2048  }
  0x1a   :  { %276 = vsyncadd [#allocation6], 4294965248  ;;  %v283_v0 = vmov 0.0   ;;  %vm284_vm0 = vmmov 0   ;;  %v57_v1 = vld [vmem:[#allocation5 + $0x78] sm:$0xff]  ;;  %v56_v2 = vld [vmem:[#allocation5 + $0x70] sm:$0xff] }
  0x1b   :  { %171 = vmatprep.subr.mxu0 %v283_v0  ;;  %203 = vmatprep.mubr.msk.f32.mxu0 %vm284_vm0, %v283_v0  ;;  %v55_v3 = vld [vmem:[#allocation5 + $0x68] sm:$0xff]  ;;  %v54_v4 = vld [vmem:[#allocation5 + $0x60] sm:$0xff]  ;;  %v53_v5 = vld [vmem:[#allocation5 + $0x58] sm:$0xff]  ;;  %s285_s24 = smov [#allocation7]  }
  0x1c   :  { %172 = vmatpush3.msra.mxu0 %v57_v1  ;;  %v52_v6 = vld [vmem:[#allocation5 + $0x50] sm:$0xff]  ;;  %v51_v7 = vld [vmem:[#allocation5 + $0x48] sm:$0xff]  ;;  %v50_v8 = vld [vmem:[#allocation5 + $0x40] sm:$0xff]  ;;  %s143_s25 = sshll.u32 %s285_s24, 4  ;;  %s144_s25 = int_to_ptr.vmem [resolvable:$true] %s143_s25 }
  0x1d   :  { %173 = vmatprep.subr.mxu0 %v283_v0  ;;  %v49_v9 = vld [vmem:[#allocation5 + $0x38] sm:$0xff]  ;;  %v48_v10 = vld [vmem:[#allocation5 + $0x30] sm:$0xff]  ;;  %v47_v11 = vld [vmem:[#allocation5 + $0x28] sm:$0xff]  ;;  %s253_s26 = scalar_lea.vmem %s144_s25, 128  ;;  %p258_p11 = scmp.lt.s32.totalorder %s144_s25, %s144_s25 }
  0x1e   :  { %174 = vmatpush3.msra.mxu0 %v56_v2  ;;  %v46_v12 = vld [vmem:[#allocation5 + $0x20] sm:$0xff]  ;;  %v45_v13 = vld [vmem:[#allocation5 + $0x18] sm:$0xff]  ;;  %v44_v14 = vld [vmem:[#allocation5 + $0x10] sm:$0xff]  ;;  %p254_p10 = scmp.ne.s32.totalorder %s144_s25, %s253_s26  ;;  %p259_p12 = scmp.lt.s32.totalorder %s253_s26, %s253_s26 }
  0x1f   :  { %175 = vmatprep.subr.mxu0 %v283_v0  ;;  %v43_v15 = vld [vmem:[#allocation5 + $0x8] sm:$0xff]  ;;  %v42_v16 = vld [vmem:[#allocation5] sm:$0xff]  ;;  %v41_v17 = vld [vmem:[#allocation2] sm:$0xff] }
  0x20   :  { %176 = vmatpush3.msra.mxu0 %v55_v3  ;;  %v153_v18 = vld [vmem:[%s320_s2] ss:$0 sm:$0xff]  ;;  %p260_p13 = por %p259_p12, %p258_p11 }
  0x21   :  { %177 = vmatprep.subr.mxu0 %v283_v0 }
  0x22   :  { %178 = vmatpush3.msra.mxu0 %v54_v4  ;;  %p261_p0 = pnand %p260_p13, %p254_p10 }
  0x23   :  { %179 = vmatprep.subr.mxu0 %v283_v0 }
  0x24   :  { %180 = vmatpush3.msra.mxu0 %v53_v5 }
  0x25   :  { %181 = vmatprep.subr.mxu0 %v283_v0 }
  0x26   :  { %182 = vmatpush3.msra.mxu0 %v52_v6 }
  0x27   :  { %183 = vmatprep.subr.mxu0 %v283_v0 }
  0x28   :  { %184 = vmatpush3.msra.mxu0 %v51_v7 }
  0x29   :  { %185 = vmatprep.subr.mxu0 %v283_v0 }
  0x2a   :  { %186 = vmatpush3.msra.mxu0 %v50_v8 }
  0x2b   :  { %187 = vmatprep.subr.mxu0 %v283_v0 }
  0x2c   :  { %188 = vmatpush3.msra.mxu0 %v49_v9 }
  0x2d   :  { %189 = vmatprep.subr.mxu0 %v283_v0 }
  0x2e   :  { %190 = vmatpush3.msra.mxu0 %v48_v10 }
  0x2f   :  { %191 = vmatprep.subr.mxu0 %v283_v0 }
  0x30   :  { %192 = vmatpush3.msra.mxu0 %v47_v11 }
  0x31   :  { %193 = vmatprep.subr.mxu0 %v283_v0 }
  0x32   :  { %194 = vmatpush3.msra.mxu0 %v46_v12 }
  0x33   :  { %195 = vmatprep.subr.mxu0 %v283_v0 }
  0x34   :  { %196 = vmatpush3.msra.mxu0 %v45_v13 }
  0x35   :  { %197 = vmatprep.subr.mxu0 %v283_v0 }
  0x36   :  { %198 = vmatpush3.msra.mxu0 %v44_v14 }
  0x37   :  { %199 = vmatprep.subr.mxu0 %v283_v0 }
  0x38   :  { %200 = vmatpush3.msra.mxu0 %v43_v15 }
  0x39   :  { %201 = vmatprep.subr.mxu0 %v283_v0 }
  0x3a   :  { %202 = vmatpush3.msra.mxu0 %v42_v16 }
  0x3b   :  { %204 = vmatmul.mubr.f32.vlgmr.msra.gmra.mxu0 %v41_v17 }
  0xfb   :  { %v131_v19 = vpop.f32.mrf.mxu0 }
  0xfc   :  { %v132_v20 = vadd.f32 %v153_v18, %v131_v19 }
  0xfd   :  { %v205_v21 = vpop.f32.mrf.mxu0 }
  0xfe   :  { %v135_v22 = vmax.f32 %v132_v20, 0.0 }
 0x100   :  { %136 = vst [vmem:[#allocation7] sm:$0xff] %v135_v22 }
 0x101   :  { %264 = shalt.err (!%p261_p0)
}
 0x102   :  { %146 = dma.vmem_to_hbm [thread:$0]  %s144_s25, 128, %s321_s3, [#allocation4]  }
 0x103   :  { %277 = dma.done.wait [#allocation4], 128  }
 0x104   :  { %278 = vsyncadd [#allocation4], 4294967168 }
 0x105   :  { %150 = vsyncpa [#allocation3], 1 }
 0x106   :  { %151 = vsyncpa [#allocation6], 1 }
 0x107   :  { %152 = vsyncpa [#allocation4], 1 }

</bundles_post_ra>
